<compile_context>
chip_gen: v6e
topology: v6e:2x2x1
jax: 0.10.0
libtpu: 0.0.40
codegen_flags: <defaults>
</compile_context>

<pallas_src>
import jax
import jax.numpy as jnp
from jax import lax
from jax.experimental import pallas as pl
from jax.experimental.pallas import tpu as pltpu

R = 8  # PixelUnshuffle / PixelShuffle factor


def _phase_softmax_kernel(x_ref, o_ref, e_ref):
    """x_ref/o_ref: (TB, H, W) planes; e_ref: f32 VMEM scratch of the same shape.

    For each plane and each 8x8 phase (row % 8, col % 8):
        y = x**2 ; out = softmax(y over that phase's (H/8)*(W/8) grid) * y
    which equals PixelShuffle(softmax(PixelUnshuffle(x)**2) * PixelUnshuffle(x)**2).
    """
    TB, H, W = x_ref.shape
    h = H // R

    # column phase (col % 8); lane-indexed mask source, built once
    lane_phase = lax.broadcasted_iota(jnp.int32, (1, 1, W), 2) % R

    def y_slab(hi):
        xs = x_ref[:, hi * R:(hi + 1) * R, :].astype(jnp.float32)
        return xs * xs

    # ---- pass 1: max over the h row-groups -> (TB, 8, W) ----
    m_rows = y_slab(0)
    for hi in range(1, h):
        m_rows = jnp.maximum(m_rows, y_slab(hi))

    # per column-phase max across all W columns, broadcast back to every column
    m = jnp.zeros_like(m_rows)               # y >= 0, so phase maxima are >= 0
    for jj in range(R):
        mask = lane_phase == jj
        mj = jnp.max(jnp.where(mask, m_rows, -jnp.inf), axis=-1, keepdims=True)
        m = jnp.where(mask, mj, m)

    # ---- pass 2: e = exp(y - m); stash e in scratch, accumulate row-group sums ----
    s_rows = jnp.zeros_like(m)
    for hi in range(h):
        e_s = jnp.exp(y_slab(hi) - m)
        e_ref[:, hi * R:(hi + 1) * R, :] = e_s
        s_rows = s_rows + e_s

    # per column-phase sum, broadcast back
    d = jnp.zeros_like(s_rows)
    for jj in range(R):
        mask = lane_phase == jj
        sj = jnp.sum(jnp.where(mask, s_rows, 0.0), axis=-1, keepdims=True)
        d = jnp.where(mask, sj, d)
    inv = 1.0 / d                             # exact reciprocal (1e-5 tolerance)

    # ---- pass 3: out = e * y / sum ----
    for hi in range(h):
        sl = slice(hi * R, (hi + 1) * R)
        o_ref[:, sl, :] = (e_ref[:, sl, :] * y_slab(hi) * inv).astype(o_ref.dtype)


def competition2_forward(x):
    """x: (B, C, H, W), H and W divisible by 8."""
    B, C, H, W = x.shape
    assert H % R == 0 and W % R == 0, "H and W must be divisible by 8"
    BC = B * C
    plane = H * W

    planes = x.reshape(BC, H, W)              # free reshape (no data movement)

    # --- VMEM-aware block-size selection over the plane axis ---
    # live VMEM per block ~ 2x input (dbl-buffered) + 2x output + 1x e-scratch
    # + small (TB,8,W) temporaries  ~= 5-6 * TB*plane*4 bytes
    budget_elems = (4 * 1024 * 1024) // 4     # ~4 MiB of f32 per block copy
    tb = 1
    for cand in range(BC, 0, -1):
        if BC % cand:
            continue
        if cand * plane > budget_elems:
            continue
        if BC >= 2 and BC // cand < 2:        # keep >=2 grid steps for megacore (v7x)
            continue
        tb = cand
        break
    # TODO(synk): planes whose own H*W*4 bytes exceed the VMEM budget need a
    # flash-style online max/sum pass over W-tiles; single-plane blocks are used as-is.

    grid = (BC // tb,)
    out = pl.pallas_call(
        _phase_softmax_kernel,
        out_shape=jax.ShapeDtypeStruct((BC, H, W), x.dtype),
        grid_spec=pltpu.PrefetchScalarGridSpec(
            num_scalar_prefetch=0,
            grid=grid,
            in_specs=[pl.BlockSpec((tb, H, W), lambda i: (i, 0, 0))],
            out_specs=pl.BlockSpec((tb, H, W), lambda i: (i, 0, 0)),
            scratch_shapes=[pltpu.VMEM((tb, H, W), jnp.float32)],
        ),
        compiler_params=pltpu.CompilerParams(
            dimension_semantics=("parallel",),
            vmem_limit_bytes=48 * 1024 * 1024,
        ),
        cost_estimate=pl.CostEstimate(
            flops=int(10 * BC * plane),
            transcendentals=int(BC * plane),
            bytes_accessed=int(2 * BC * plane * 4),
        ),
    )(planes)
    return out.reshape(B, C, H, W)


# ---------------- pure-JAX reference (mirrors the PyTorch module) ----------------
def _pixel_unshuffle(x, r):
    B, C, H, W = x.shape
    h, w = H // r, W // r
    x = x.reshape(B, C, h, r, w, r)
    x = jnp.transpose(x, (0, 1, 3, 5, 2, 4))
    return x.reshape(B, C * r * r, h, w)


def _pixel_shuffle(x, r):
    B, Cr2, h, w = x.shape
    C = Cr2 // (r * r)
    x = x.reshape(B, C, r, r, h, w)
    x = jnp.transpose(x, (0, 1, 4, 2, 5, 3))
    return x.reshape(B, C, h * r, w * r)


def _reference_forward(x):
    xd = _pixel_unshuffle(x, R) ** 2
    B, Cu, h, w = xd.shape
    flat = xd.reshape(B, Cu, -1)
    sm = jax.nn.softmax(flat, axis=-1).reshape(B, Cu, h, w)
    return _pixel_shuffle(sm * xd, R)


if __name__ == "__main__":
    key = jax.random.PRNGKey(0)
    B, C, H, W = 2, 4, 16, 16
    x = jax.random.normal(key, (B, C, H, W), dtype=jnp.float32)

    out = competition2_forward(x)
    out = jax.block_until_ready(out)

    ref = _reference_forward(x)
    assert out.shape == (B, C, H, W)
    assert jnp.allclose(out, ref, atol=1e-5, rtol=1e-5), "mismatch vs reference"

    print("KERNEL_OK")
</pallas_src>

<mosaic_0001>
module attributes {stable_mosaic.version = 11 : i64} {
  func.func @_phase_softmax_kernel(%arg0: i32, %arg1: memref<4x16x16xf32, #tpu.memory_space<vmem>>, %arg2: memref<4x16x16xf32, #tpu.memory_space<vmem>>, %arg3: memref<4x16x16xf32, #tpu.memory_space<vmem>>) attributes {dimension_semantics = [#tpu.dimension_semantics<parallel>], iteration_bounds = array<i64: 2>, scalar_prefetch = 0 : i64, scratch_operands = 1 : i64, tpu.core_type = #tpu.core_type<tc>, window_params = [{transform_indices = @transform_0, window_bounds = array<i64: 4, 16, 16>}, {transform_indices = @transform_1, window_bounds = array<i64: 4, 16, 16>}]} {
    %0 = tpu.iota {dimensions = array<i32: 2>} : vector<1x1x16xi32>
    %c8_i32 = arith.constant 8 : i32
    %c0_i32 = arith.constant 0 : i32
    %1 = arith.cmpi eq, %c8_i32, %c0_i32 : i32
    %c1_i32 = arith.constant 1 : i32
    %2 = arith.select %1, %c1_i32, %c8_i32 : i32
    %3 = vector.broadcast %2 : i32 to vector<1x1x16xi32>
    %4 = arith.remsi %0, %3 : vector<1x1x16xi32>
    %c0_i32_0 = arith.constant 0 : i32
    %5 = vector.broadcast %c0_i32_0 : i32 to vector<1x1x16xi32>
    %6 = arith.cmpi ne, %4, %5 : vector<1x1x16xi32>
    %c0_i32_1 = arith.constant 0 : i32
    %7 = vector.broadcast %c0_i32_1 : i32 to vector<1x1x16xi32>
    %8 = arith.cmpi slt, %4, %7 : vector<1x1x16xi32>
    %c0_i32_2 = arith.constant 0 : i32
    %9 = arith.cmpi slt, %2, %c0_i32_2 : i32
    %10 = vector.broadcast %9 : i1 to vector<1x1x16xi1>
    %11 = vector.broadcast %10 : vector<1x1x16xi1> to vector<1x1x16xi1>
    %12 = arith.xori %8, %11 : vector<1x1x16xi1>
    %13 = arith.andi %12, %6 : vector<1x1x16xi1>
    %14 = vector.broadcast %2 : i32 to vector<1x1x16xi32>
    %15 = arith.addi %4, %14 : vector<1x1x16xi32>
    %16 = arith.select %13, %15, %4 : vector<1x1x16xi1>, vector<1x1x16xi32>
    %c0 = arith.constant 0 : index
    %c0_3 = arith.constant 0 : index
    %c0_4 = arith.constant 0 : index
    %17 = vector.load %arg1[%c0, %c0_3, %c0_4] : memref<4x16x16xf32, #tpu.memory_space<vmem>>, vector<4x8x16xf32>
    %18 = arith.mulf %17, %17 : vector<4x8x16xf32>
    %c0_5 = arith.constant 0 : index
    %c8 = arith.constant 8 : index
    %c0_6 = arith.constant 0 : index
    %19 = vector.load %arg1[%c0_5, %c8, %c0_6] : memref<4x16x16xf32, #tpu.memory_space<vmem>>, vector<4x8x16xf32>
    %20 = arith.mulf %19, %19 : vector<4x8x16xf32>
    %21 = arith.maximumf %18, %20 : vector<4x8x16xf32>
    %cst = arith.constant 0.000000e+00 : f32
    %22 = vector.broadcast %cst : f32 to vector<4x8x16xf32>
    %c0_i32_7 = arith.constant 0 : i32
    %23 = vector.broadcast %c0_i32_7 : i32 to vector<1x1x16xi32>
    %24 = arith.cmpi eq, %16, %23 : vector<1x1x16xi32>
    %cst_8 = arith.constant 0xFF800000 : f32
    %25 = vector.shape_cast %24 : vector<1x1x16xi1> to vector<1x1x16xi1>
    %26 = vector.broadcast %25 : vector<1x1x16xi1> to vector<4x8x16xi1>
    %27 = vector.broadcast %cst_8 : f32 to vector<4x8x16xf32>
    %28 = arith.select %26, %21, %27 : vector<4x8x16xi1>, vector<4x8x16xf32>
    %cst_9 = arith.constant dense<0xFF800000> : vector<4x8xf32>
    %29 = vector.multi_reduction <maximumf>, %28, %cst_9 [2] : vector<4x8x16xf32> to vector<4x8xf32>
    %30 = vector.shape_cast %29 : vector<4x8xf32> to vector<4x8x1xf32>
    %31 = vector.shape_cast %24 : vector<1x1x16xi1> to vector<1x1x16xi1>
    %32 = vector.broadcast %31 : vector<1x1x16xi1> to vector<4x8x16xi1>
    %33 = vector.shape_cast %30 : vector<4x8x1xf32> to vector<4x8x1xf32>
    %34 = vector.broadcast %33 : vector<4x8x1xf32> to vector<4x8x16xf32>
    %35 = arith.select %32, %34, %22 : vector<4x8x16xi1>, vector<4x8x16xf32>
    %c1_i32_10 = arith.constant 1 : i32
    %36 = vector.broadcast %c1_i32_10 : i32 to vector<1x1x16xi32>
    %37 = arith.cmpi eq, %16, %36 : vector<1x1x16xi32>
    %cst_11 = arith.constant 0xFF800000 : f32
    %38 = vector.shape_cast %37 : vector<1x1x16xi1> to vector<1x1x16xi1>
    %39 = vector.broadcast %38 : vector<1x1x16xi1> to vector<4x8x16xi1>
    %40 = vector.broadcast %cst_11 : f32 to vector<4x8x16xf32>
    %41 = arith.select %39, %21, %40 : vector<4x8x16xi1>, vector<4x8x16xf32>
    %cst_12 = arith.constant dense<0xFF800000> : vector<4x8xf32>
    %42 = vector.multi_reduction <maximumf>, %41, %cst_12 [2] : vector<4x8x16xf32> to vector<4x8xf32>
    %43 = vector.shape_cast %42 : vector<4x8xf32> to vector<4x8x1xf32>
    %44 = vector.shape_cast %37 : vector<1x1x16xi1> to vector<1x1x16xi1>
    %45 = vector.broadcast %44 : vector<1x1x16xi1> to vector<4x8x16xi1>
    %46 = vector.shape_cast %43 : vector<4x8x1xf32> to vector<4x8x1xf32>
    %47 = vector.broadcast %46 : vector<4x8x1xf32> to vector<4x8x16xf32>
    %48 = arith.select %45, %47, %35 : vector<4x8x16xi1>, vector<4x8x16xf32>
    %c2_i32 = arith.constant 2 : i32
    %49 = vector.broadcast %c2_i32 : i32 to vector<1x1x16xi32>
    %50 = arith.cmpi eq, %16, %49 : vector<1x1x16xi32>
    %cst_13 = arith.constant 0xFF800000 : f32
    %51 = vector.shape_cast %50 : vector<1x1x16xi1> to vector<1x1x16xi1>
    %52 = vector.broadcast %51 : vector<1x1x16xi1> to vector<4x8x16xi1>
    %53 = vector.broadcast %cst_13 : f32 to vector<4x8x16xf32>
    %54 = arith.select %52, %21, %53 : vector<4x8x16xi1>, vector<4x8x16xf32>
    %cst_14 = arith.constant dense<0xFF800000> : vector<4x8xf32>
    %55 = vector.multi_reduction <maximumf>, %54, %cst_14 [2] : vector<4x8x16xf32> to vector<4x8xf32>
    %56 = vector.shape_cast %55 : vector<4x8xf32> to vector<4x8x1xf32>
    %57 = vector.shape_cast %50 : vector<1x1x16xi1> to vector<1x1x16xi1>
    %58 = vector.broadcast %57 : vector<1x1x16xi1> to vector<4x8x16xi1>
    %59 = vector.shape_cast %56 : vector<4x8x1xf32> to vector<4x8x1xf32>
    %60 = vector.broadcast %59 : vector<4x8x1xf32> to vector<4x8x16xf32>
    %61 = arith.select %58, %60, %48 : vector<4x8x16xi1>, vector<4x8x16xf32>
    %c3_i32 = arith.constant 3 : i32
    %62 = vector.broadcast %c3_i32 : i32 to vector<1x1x16xi32>
    %63 = arith.cmpi eq, %16, %62 : vector<1x1x16xi32>
    %cst_15 = arith.constant 0xFF800000 : f32
    %64 = vector.shape_cast %63 : vector<1x1x16xi1> to vector<1x1x16xi1>
    %65 = vector.broadcast %64 : vector<1x1x16xi1> to vector<4x8x16xi1>
    %66 = vector.broadcast %cst_15 : f32 to vector<4x8x16xf32>
    %67 = arith.select %65, %21, %66 : vector<4x8x16xi1>, vector<4x8x16xf32>
    %cst_16 = arith.constant dense<0xFF800000> : vector<4x8xf32>
    %68 = vector.multi_reduction <maximumf>, %67, %cst_16 [2] : vector<4x8x16xf32> to vector<4x8xf32>
    %69 = vector.shape_cast %68 : vector<4x8xf32> to vector<4x8x1xf32>
    %70 = vector.shape_cast %63 : vector<1x1x16xi1> to vector<1x1x16xi1>
    %71 = vector.broadcast %70 : vector<1x1x16xi1> to vector<4x8x16xi1>
    %72 = vector.shape_cast %69 : vector<4x8x1xf32> to vector<4x8x1xf32>
    %73 = vector.broadcast %72 : vector<4x8x1xf32> to vector<4x8x16xf32>
    %74 = arith.select %71, %73, %61 : vector<4x8x16xi1>, vector<4x8x16xf32>
    %c4_i32 = arith.constant 4 : i32
    %75 = vector.broadcast %c4_i32 : i32 to vector<1x1x16xi32>
    %76 = arith.cmpi eq, %16, %75 : vector<1x1x16xi32>
    %cst_17 = arith.constant 0xFF800000 : f32
    %77 = vector.shape_cast %76 : vector<1x1x16xi1> to vector<1x1x16xi1>
    %78 = vector.broadcast %77 : vector<1x1x16xi1> to vector<4x8x16xi1>
    %79 = vector.broadcast %cst_17 : f32 to vector<4x8x16xf32>
    %80 = arith.select %78, %21, %79 : vector<4x8x16xi1>, vector<4x8x16xf32>
    %cst_18 = arith.constant dense<0xFF800000> : vector<4x8xf32>
    %81 = vector.multi_reduction <maximumf>, %80, %cst_18 [2] : vector<4x8x16xf32> to vector<4x8xf32>
    %82 = vector.shape_cast %81 : vector<4x8xf32> to vector<4x8x1xf32>
    %83 = vector.shape_cast %76 : vector<1x1x16xi1> to vector<1x1x16xi1>
    %84 = vector.broadcast %83 : vector<1x1x16xi1> to vector<4x8x16xi1>
    %85 = vector.shape_cast %82 : vector<4x8x1xf32> to vector<4x8x1xf32>
    %86 = vector.broadcast %85 : vector<4x8x1xf32> to vector<4x8x16xf32>
    %87 = arith.select %84, %86, %74 : vector<4x8x16xi1>, vector<4x8x16xf32>
    %c5_i32 = arith.constant 5 : i32
    %88 = vector.broadcast %c5_i32 : i32 to vector<1x1x16xi32>
    %89 = arith.cmpi eq, %16, %88 : vector<1x1x16xi32>
    %cst_19 = arith.constant 0xFF800000 : f32
    %90 = vector.shape_cast %89 : vector<1x1x16xi1> to vector<1x1x16xi1>
    %91 = vector.broadcast %90 : vector<1x1x16xi1> to vector<4x8x16xi1>
    %92 = vector.broadcast %cst_19 : f32 to vector<4x8x16xf32>
    %93 = arith.select %91, %21, %92 : vector<4x8x16xi1>, vector<4x8x16xf32>
    %cst_20 = arith.constant dense<0xFF800000> : vector<4x8xf32>
    %94 = vector.multi_reduction <maximumf>, %93, %cst_20 [2] : vector<4x8x16xf32> to vector<4x8xf32>
    %95 = vector.shape_cast %94 : vector<4x8xf32> to vector<4x8x1xf32>
    %96 = vector.shape_cast %89 : vector<1x1x16xi1> to vector<1x1x16xi1>
    %97 = vector.broadcast %96 : vector<1x1x16xi1> to vector<4x8x16xi1>
    %98 = vector.shape_cast %95 : vector<4x8x1xf32> to vector<4x8x1xf32>
    %99 = vector.broadcast %98 : vector<4x8x1xf32> to vector<4x8x16xf32>
    %100 = arith.select %97, %99, %87 : vector<4x8x16xi1>, vector<4x8x16xf32>
    %c6_i32 = arith.constant 6 : i32
    %101 = vector.broadcast %c6_i32 : i32 to vector<1x1x16xi32>
    %102 = arith.cmpi eq, %16, %101 : vector<1x1x16xi32>
    %cst_21 = arith.constant 0xFF800000 : f32
    %103 = vector.shape_cast %102 : vector<1x1x16xi1> to vector<1x1x16xi1>
    %104 = vector.broadcast %103 : vector<1x1x16xi1> to vector<4x8x16xi1>
    %105 = vector.broadcast %cst_21 : f32 to vector<4x8x16xf32>
    %106 = arith.select %104, %21, %105 : vector<4x8x16xi1>, vector<4x8x16xf32>
    %cst_22 = arith.constant dense<0xFF800000> : vector<4x8xf32>
    %107 = vector.multi_reduction <maximumf>, %106, %cst_22 [2] : vector<4x8x16xf32> to vector<4x8xf32>
    %108 = vector.shape_cast %107 : vector<4x8xf32> to vector<4x8x1xf32>
    %109 = vector.shape_cast %102 : vector<1x1x16xi1> to vector<1x1x16xi1>
    %110 = vector.broadcast %109 : vector<1x1x16xi1> to vector<4x8x16xi1>
    %111 = vector.shape_cast %108 : vector<4x8x1xf32> to vector<4x8x1xf32>
    %112 = vector.broadcast %111 : vector<4x8x1xf32> to vector<4x8x16xf32>
    %113 = arith.select %110, %112, %100 : vector<4x8x16xi1>, vector<4x8x16xf32>
    %c7_i32 = arith.constant 7 : i32
    %114 = vector.broadcast %c7_i32 : i32 to vector<1x1x16xi32>
    %115 = arith.cmpi eq, %16, %114 : vector<1x1x16xi32>
    %cst_23 = arith.constant 0xFF800000 : f32
    %116 = vector.shape_cast %115 : vector<1x1x16xi1> to vector<1x1x16xi1>
    %117 = vector.broadcast %116 : vector<1x1x16xi1> to vector<4x8x16xi1>
    %118 = vector.broadcast %cst_23 : f32 to vector<4x8x16xf32>
    %119 = arith.select %117, %21, %118 : vector<4x8x16xi1>, vector<4x8x16xf32>
    %cst_24 = arith.constant dense<0xFF800000> : vector<4x8xf32>
    %120 = vector.multi_reduction <maximumf>, %119, %cst_24 [2] : vector<4x8x16xf32> to vector<4x8xf32>
    %121 = vector.shape_cast %120 : vector<4x8xf32> to vector<4x8x1xf32>
    %122 = vector.shape_cast %115 : vector<1x1x16xi1> to vector<1x1x16xi1>
    %123 = vector.broadcast %122 : vector<1x1x16xi1> to vector<4x8x16xi1>
    %124 = vector.shape_cast %121 : vector<4x8x1xf32> to vector<4x8x1xf32>
    %125 = vector.broadcast %124 : vector<4x8x1xf32> to vector<4x8x16xf32>
    %126 = arith.select %123, %125, %113 : vector<4x8x16xi1>, vector<4x8x16xf32>
    %cst_25 = arith.constant 0.000000e+00 : f32
    %127 = vector.broadcast %cst_25 : f32 to vector<4x8x16xf32>
    %c0_26 = arith.constant 0 : index
    %c0_27 = arith.constant 0 : index
    %c0_28 = arith.constant 0 : index
    %128 = vector.load %arg1[%c0_26, %c0_27, %c0_28] : memref<4x16x16xf32, #tpu.memory_space<vmem>>, vector<4x8x16xf32>
    %129 = arith.mulf %128, %128 : vector<4x8x16xf32>
    %130 = arith.subf %129, %126 : vector<4x8x16xf32>
    %131 = math.exp %130 : vector<4x8x16xf32>
    %c0_29 = arith.constant 0 : index
    %c0_30 = arith.constant 0 : index
    %c0_31 = arith.constant 0 : index
    %132 = vector.load %arg3[%c0_29, %c0_30, %c0_31] : memref<4x16x16xf32, #tpu.memory_space<vmem>>, vector<4x8x16xf32>
    tpu.vector_store %arg3[%c0_29, %c0_30, %c0_31], %131 {strides = array<i32>} : memref<4x16x16xf32, #tpu.memory_space<vmem>>, vector<4x8x16xf32>,
    %133 = arith.addf %127, %131 : vector<4x8x16xf32>
    %c0_32 = arith.constant 0 : index
    %c8_33 = arith.constant 8 : index
    %c0_34 = arith.constant 0 : index
    %134 = vector.load %arg1[%c0_32, %c8_33, %c0_34] : memref<4x16x16xf32, #tpu.memory_space<vmem>>, vector<4x8x16xf32>
    %135 = arith.mulf %134, %134 : vector<4x8x16xf32>
    %136 = arith.subf %135, %126 : vector<4x8x16xf32>
    %137 = math.exp %136 : vector<4x8x16xf32>
    %c0_35 = arith.constant 0 : index
    %c8_36 = arith.constant 8 : index
    %c0_37 = arith.constant 0 : index
    %138 = vector.load %arg3[%c0_35, %c8_36, %c0_37] : memref<4x16x16xf32, #tpu.memory_space<vmem>>, vector<4x8x16xf32>
    tpu.vector_store %arg3[%c0_35, %c8_36, %c0_37], %137 {strides = array<i32>} : memref<4x16x16xf32, #tpu.memory_space<vmem>>, vector<4x8x16xf32>,
    %139 = arith.addf %133, %137 : vector<4x8x16xf32>
    %cst_38 = arith.constant 0.000000e+00 : f32
    %140 = vector.broadcast %cst_38 : f32 to vector<4x8x16xf32>
    %c0_i32_39 = arith.constant 0 : i32
    %141 = vector.broadcast %c0_i32_39 : i32 to vector<1x1x16xi32>
    %142 = arith.cmpi eq, %16, %141 : vector<1x1x16xi32>
    %cst_40 = arith.constant 0.000000e+00 : f32
    %143 = vector.shape_cast %142 : vector<1x1x16xi1> to vector<1x1x16xi1>
    %144 = vector.broadcast %143 : vector<1x1x16xi1> to vector<4x8x16xi1>
    %145 = vector.broadcast %cst_40 : f32 to vector<4x8x16xf32>
    %146 = arith.select %144, %139, %145 : vector<4x8x16xi1>, vector<4x8x16xf32>
    %cst_41 = arith.constant dense<0.000000e+00> : vector<4x8xf32>
    %147 = vector.multi_reduction <add>, %146, %cst_41 [2] : vector<4x8x16xf32> to vector<4x8xf32>
    %148 = vector.shape_cast %147 : vector<4x8xf32> to vector<4x8x1xf32>
    %149 = vector.shape_cast %142 : vector<1x1x16xi1> to vector<1x1x16xi1>
    %150 = vector.broadcast %149 : vector<1x1x16xi1> to vector<4x8x16xi1>
    %151 = vector.shape_cast %148 : vector<4x8x1xf32> to vector<4x8x1xf32>
    %152 = vector.broadcast %151 : vector<4x8x1xf32> to vector<4x8x16xf32>
    %153 = arith.select %150, %152, %140 : vector<4x8x16xi1>, vector<4x8x16xf32>
    %c1_i32_42 = arith.constant 1 : i32
    %154 = vector.broadcast %c1_i32_42 : i32 to vector<1x1x16xi32>
    %155 = arith.cmpi eq, %16, %154 : vector<1x1x16xi32>
    %cst_43 = arith.constant 0.000000e+00 : f32
    %156 = vector.shape_cast %155 : vector<1x1x16xi1> to vector<1x1x16xi1>
    %157 = vector.broadcast %156 : vector<1x1x16xi1> to vector<4x8x16xi1>
    %158 = vector.broadcast %cst_43 : f32 to vector<4x8x16xf32>
    %159 = arith.select %157, %139, %158 : vector<4x8x16xi1>, vector<4x8x16xf32>
    %cst_44 = arith.constant dense<0.000000e+00> : vector<4x8xf32>
    %160 = vector.multi_reduction <add>, %159, %cst_44 [2] : vector<4x8x16xf32> to vector<4x8xf32>
    %161 = vector.shape_cast %160 : vector<4x8xf32> to vector<4x8x1xf32>
    %162 = vector.shape_cast %155 : vector<1x1x16xi1> to vector<1x1x16xi1>
    %163 = vector.broadcast %162 : vector<1x1x16xi1> to vector<4x8x16xi1>
    %164 = vector.shape_cast %161 : vector<4x8x1xf32> to vector<4x8x1xf32>
    %165 = vector.broadcast %164 : vector<4x8x1xf32> to vector<4x8x16xf32>
    %166 = arith.select %163, %165, %153 : vector<4x8x16xi1>, vector<4x8x16xf32>
    %c2_i32_45 = arith.constant 2 : i32
    %167 = vector.broadcast %c2_i32_45 : i32 to vector<1x1x16xi32>
    %168 = arith.cmpi eq, %16, %167 : vector<1x1x16xi32>
    %cst_46 = arith.constant 0.000000e+00 : f32
    %169 = vector.shape_cast %168 : vector<1x1x16xi1> to vector<1x1x16xi1>
    %170 = vector.broadcast %169 : vector<1x1x16xi1> to vector<4x8x16xi1>
    %171 = vector.broadcast %cst_46 : f32 to vector<4x8x16xf32>
    %172 = arith.select %170, %139, %171 : vector<4x8x16xi1>, vector<4x8x16xf32>
    %cst_47 = arith.constant dense<0.000000e+00> : vector<4x8xf32>
    %173 = vector.multi_reduction <add>, %172, %cst_47 [2] : vector<4x8x16xf32> to vector<4x8xf32>
    %174 = vector.shape_cast %173 : vector<4x8xf32> to vector<4x8x1xf32>
    %175 = vector.shape_cast %168 : vector<1x1x16xi1> to vector<1x1x16xi1>
    %176 = vector.broadcast %175 : vector<1x1x16xi1> to vector<4x8x16xi1>
    %177 = vector.shape_cast %174 : vector<4x8x1xf32> to vector<4x8x1xf32>
    %178 = vector.broadcast %177 : vector<4x8x1xf32> to vector<4x8x16xf32>
    %179 = arith.select %176, %178, %166 : vector<4x8x16xi1>, vector<4x8x16xf32>
    %c3_i32_48 = arith.constant 3 : i32
    %180 = vector.broadcast %c3_i32_48 : i32 to vector<1x1x16xi32>
    %181 = arith.cmpi eq, %16, %180 : vector<1x1x16xi32>
    %cst_49 = arith.constant 0.000000e+00 : f32
    %182 = vector.shape_cast %181 : vector<1x1x16xi1> to vector<1x1x16xi1>
    %183 = vector.broadcast %182 : vector<1x1x16xi1> to vector<4x8x16xi1>
    %184 = vector.broadcast %cst_49 : f32 to vector<4x8x16xf32>
    %185 = arith.select %183, %139, %184 : vector<4x8x16xi1>, vector<4x8x16xf32>
    %cst_50 = arith.constant dense<0.000000e+00> : vector<4x8xf32>
    %186 = vector.multi_reduction <add>, %185, %cst_50 [2] : vector<4x8x16xf32> to vector<4x8xf32>
    %187 = vector.shape_cast %186 : vector<4x8xf32> to vector<4x8x1xf32>
    %188 = vector.shape_cast %181 : vector<1x1x16xi1> to vector<1x1x16xi1>
    %189 = vector.broadcast %188 : vector<1x1x16xi1> to vector<4x8x16xi1>
    %190 = vector.shape_cast %187 : vector<4x8x1xf32> to vector<4x8x1xf32>
    %191 = vector.broadcast %190 : vector<4x8x1xf32> to vector<4x8x16xf32>
    %192 = arith.select %189, %191, %179 : vector<4x8x16xi1>, vector<4x8x16xf32>
    %c4_i32_51 = arith.constant 4 : i32
    %193 = vector.broadcast %c4_i32_51 : i32 to vector<1x1x16xi32>
    %194 = arith.cmpi eq, %16, %193 : vector<1x1x16xi32>
    %cst_52 = arith.constant 0.000000e+00 : f32
    %195 = vector.shape_cast %194 : vector<1x1x16xi1> to vector<1x1x16xi1>
    %196 = vector.broadcast %195 : vector<1x1x16xi1> to vector<4x8x16xi1>
    %197 = vector.broadcast %cst_52 : f32 to vector<4x8x16xf32>
    %198 = arith.select %196, %139, %197 : vector<4x8x16xi1>, vector<4x8x16xf32>
    %cst_53 = arith.constant dense<0.000000e+00> : vector<4x8xf32>
    %199 = vector.multi_reduction <add>, %198, %cst_53 [2] : vector<4x8x16xf32> to vector<4x8xf32>
    %200 = vector.shape_cast %199 : vector<4x8xf32> to vector<4x8x1xf32>
    %201 = vector.shape_cast %194 : vector<1x1x16xi1> to vector<1x1x16xi1>
    %202 = vector.broadcast %201 : vector<1x1x16xi1> to vector<4x8x16xi1>
    %203 = vector.shape_cast %200 : vector<4x8x1xf32> to vector<4x8x1xf32>
    %204 = vector.broadcast %203 : vector<4x8x1xf32> to vector<4x8x16xf32>
    %205 = arith.select %202, %204, %192 : vector<4x8x16xi1>, vector<4x8x16xf32>
    %c5_i32_54 = arith.constant 5 : i32
    %206 = vector.broadcast %c5_i32_54 : i32 to vector<1x1x16xi32>
    %207 = arith.cmpi eq, %16, %206 : vector<1x1x16xi32>
    %cst_55 = arith.constant 0.000000e+00 : f32
    %208 = vector.shape_cast %207 : vector<1x1x16xi1> to vector<1x1x16xi1>
    %209 = vector.broadcast %208 : vector<1x1x16xi1> to vector<4x8x16xi1>
    %210 = vector.broadcast %cst_55 : f32 to vector<4x8x16xf32>
    %211 = arith.select %209, %139, %210 : vector<4x8x16xi1>, vector<4x8x16xf32>
    %cst_56 = arith.constant dense<0.000000e+00> : vector<4x8xf32>
    %212 = vector.multi_reduction <add>, %211, %cst_56 [2] : vector<4x8x16xf32> to vector<4x8xf32>
    %213 = vector.shape_cast %212 : vector<4x8xf32> to vector<4x8x1xf32>
    %214 = vector.shape_cast %207 : vector<1x1x16xi1> to vector<1x1x16xi1>
    %215 = vector.broadcast %214 : vector<1x1x16xi1> to vector<4x8x16xi1>
    %216 = vector.shape_cast %213 : vector<4x8x1xf32> to vector<4x8x1xf32>
    %217 = vector.broadcast %216 : vector<4x8x1xf32> to vector<4x8x16xf32>
    %218 = arith.select %215, %217, %205 : vector<4x8x16xi1>, vector<4x8x16xf32>
    %c6_i32_57 = arith.constant 6 : i32
    %219 = vector.broadcast %c6_i32_57 : i32 to vector<1x1x16xi32>
    %220 = arith.cmpi eq, %16, %219 : vector<1x1x16xi32>
    %cst_58 = arith.constant 0.000000e+00 : f32
    %221 = vector.shape_cast %220 : vector<1x1x16xi1> to vector<1x1x16xi1>
    %222 = vector.broadcast %221 : vector<1x1x16xi1> to vector<4x8x16xi1>
    %223 = vector.broadcast %cst_58 : f32 to vector<4x8x16xf32>
    %224 = arith.select %222, %139, %223 : vector<4x8x16xi1>, vector<4x8x16xf32>
    %cst_59 = arith.constant dense<0.000000e+00> : vector<4x8xf32>
    %225 = vector.multi_reduction <add>, %224, %cst_59 [2] : vector<4x8x16xf32> to vector<4x8xf32>
    %226 = vector.shape_cast %225 : vector<4x8xf32> to vector<4x8x1xf32>
    %227 = vector.shape_cast %220 : vector<1x1x16xi1> to vector<1x1x16xi1>
    %228 = vector.broadcast %227 : vector<1x1x16xi1> to vector<4x8x16xi1>
    %229 = vector.shape_cast %226 : vector<4x8x1xf32> to vector<4x8x1xf32>
    %230 = vector.broadcast %229 : vector<4x8x1xf32> to vector<4x8x16xf32>
    %231 = arith.select %228, %230, %218 : vector<4x8x16xi1>, vector<4x8x16xf32>
    %c7_i32_60 = arith.constant 7 : i32
    %232 = vector.broadcast %c7_i32_60 : i32 to vector<1x1x16xi32>
    %233 = arith.cmpi eq, %16, %232 : vector<1x1x16xi32>
    %cst_61 = arith.constant 0.000000e+00 : f32
    %234 = vector.shape_cast %233 : vector<1x1x16xi1> to vector<1x1x16xi1>
    %235 = vector.broadcast %234 : vector<1x1x16xi1> to vector<4x8x16xi1>
    %236 = vector.broadcast %cst_61 : f32 to vector<4x8x16xf32>
    %237 = arith.select %235, %139, %236 : vector<4x8x16xi1>, vector<4x8x16xf32>
    %cst_62 = arith.constant dense<0.000000e+00> : vector<4x8xf32>
    %238 = vector.multi_reduction <add>, %237, %cst_62 [2] : vector<4x8x16xf32> to vector<4x8xf32>
    %239 = vector.shape_cast %238 : vector<4x8xf32> to vector<4x8x1xf32>
    %240 = vector.shape_cast %233 : vector<1x1x16xi1> to vector<1x1x16xi1>
    %241 = vector.broadcast %240 : vector<1x1x16xi1> to vector<4x8x16xi1>
    %242 = vector.shape_cast %239 : vector<4x8x1xf32> to vector<4x8x1xf32>
    %243 = vector.broadcast %242 : vector<4x8x1xf32> to vector<4x8x16xf32>
    %244 = arith.select %241, %243, %231 : vector<4x8x16xi1>, vector<4x8x16xf32>
    %cst_63 = arith.constant 1.000000e+00 : f32
    %245 = vector.broadcast %cst_63 : f32 to vector<4x8x16xf32>
    %246 = arith.divf %245, %244 : vector<4x8x16xf32>
    %c0_64 = arith.constant 0 : index
    %c0_65 = arith.constant 0 : index
    %c0_66 = arith.constant 0 : index
    %247 = vector.load %arg3[%c0_64, %c0_65, %c0_66] : memref<4x16x16xf32, #tpu.memory_space<vmem>>, vector<4x8x16xf32>
    %c0_67 = arith.constant 0 : index
    %c0_68 = arith.constant 0 : index
    %c0_69 = arith.constant 0 : index
    %248 = vector.load %arg1[%c0_67, %c0_68, %c0_69] : memref<4x16x16xf32, #tpu.memory_space<vmem>>, vector<4x8x16xf32>
    %249 = arith.mulf %248, %248 : vector<4x8x16xf32>
    %250 = arith.mulf %247, %249 : vector<4x8x16xf32>
    %251 = arith.mulf %250, %246 : vector<4x8x16xf32>
    %c0_70 = arith.constant 0 : index
    %c0_71 = arith.constant 0 : index
    %c0_72 = arith.constant 0 : index
    %252 = vector.load %arg2[%c0_70, %c0_71, %c0_72] : memref<4x16x16xf32, #tpu.memory_space<vmem>>, vector<4x8x16xf32>
    tpu.vector_store %arg2[%c0_70, %c0_71, %c0_72], %251 {strides = array<i32>} : memref<4x16x16xf32, #tpu.memory_space<vmem>>, vector<4x8x16xf32>,
    %c0_73 = arith.constant 0 : index
    %c8_74 = arith.constant 8 : index
    %c0_75 = arith.constant 0 : index
    %253 = vector.load %arg3[%c0_73, %c8_74, %c0_75] : memref<4x16x16xf32, #tpu.memory_space<vmem>>, vector<4x8x16xf32>
    %c0_76 = arith.constant 0 : index
    %c8_77 = arith.constant 8 : index
    %c0_78 = arith.constant 0 : index
    %254 = vector.load %arg1[%c0_76, %c8_77, %c0_78] : memref<4x16x16xf32, #tpu.memory_space<vmem>>, vector<4x8x16xf32>
    %255 = arith.mulf %254, %254 : vector<4x8x16xf32>
    %256 = arith.mulf %253, %255 : vector<4x8x16xf32>
    %257 = arith.mulf %256, %246 : vector<4x8x16xf32>
    %c0_79 = arith.constant 0 : index
    %c8_80 = arith.constant 8 : index
    %c0_81 = arith.constant 0 : index
    %258 = vector.load %arg2[%c0_79, %c8_80, %c0_81] : memref<4x16x16xf32, #tpu.memory_space<vmem>>, vector<4x8x16xf32>
    tpu.vector_store %arg2[%c0_79, %c8_80, %c0_81], %257 {strides = array<i32>} : memref<4x16x16xf32, #tpu.memory_space<vmem>>, vector<4x8x16xf32>,
    return
  }
  func.func @transform_0(%arg0: i32) -> (i32, i32, i32) {
    %c0_i32 = arith.constant 0 : i32
    %c0_i32_0 = arith.constant 0 : i32
    %c0_i32_1 = arith.constant 0 : i32
    return %arg0, %c0_i32, %c0_i32_0 : i32, i32, i32
  }
  func.func @transform_1(%arg0: i32) -> (i32, i32, i32) {
    %c0_i32 = arith.constant 0 : i32
    %c0_i32_0 = arith.constant 0 : i32
    %c0_i32_1 = arith.constant 0 : i32
    return %arg0, %c0_i32, %c0_i32_0 : i32, i32, i32
  }
}

</mosaic_0001>

<bundles_post_ra>
// kernel: tpu_custom_call.1
= control target key start
LH: loop header
LB: loop body
LE: loop exit
PB: predicated region body
PF: predicated region fallthrough
CT: control target
= control target key end

     0   :  { %6 = vsyncpa [#allocation4], 0  ;;  %s1537_s0 = inlined_call_operand.hbm [shape: f32[8,16,16], index: 0, kind: input, shape index: {}]   ;;  %s1538_s1 = inlined_call_operand.hbm [shape: f32[8,16,16], index: 1, kind: output, shape index: {}]  }
   0x1   :  { %8 = vsyncpa [#allocation4 + $0x1], 0 }
   0x2   :  { %9 = vsyncpa [#allocation5], 0 }
   0x3   :  { %11 = vsyncpa [#allocation5 + $0x1], 0  ;;  %s913_s6 = smov 0   ;;  %s915_s7 = smov 0  }
   0x4   :  { %s917_s8 = smov 0   ;;  %s919_s9 = smov 0  }
   0x5 LB: > { %s934_s10 = sadd.s32 4294967295, %s895_s9   ;;  %s709_s11 = sadd.s32 4294967294, %s895_s9   ;;  %s895_s9 = sphi %s919_s9, %s1553_s9   ;;  %s891_s8 = sphi %s917_s8, %s1552_s8   ;;  %s887_s7 = sphi %s915_s7, %s1551_s7   ;;  %s883_s6 = sphi %s913_s6, %s1550_s6  }
   0x6   : > { %s938_s12 = sadd.s32 1, %s895_s9   ;;  %s24_s13 = sadd.s32 1, %s891_s8 }
   0x7   : > { %s21_s14 = ssub.s32 %s895_s9, %s938_s12  ;;  %p31_p0 = scmp.ne.s32.totalorder %s891_s8, %s887_s7 }
   0x8   : > { %p22_p1 = scmp.eq.s32.totalorder %s21_s14, 0  ;;  %p32_p2 = scmp.eq.s32.totalorder %s895_s9, 0 }
   0x9   : > { %p37_p3 = scmp.ne.s32.totalorder %s887_s7, %s883_s6  ;;  %p38_p4 = scmp.eq.s32.totalorder %s934_s10, 0 }
   0xa   : > { %s950_s15 = scalar_select %p22_p1, %s891_s8, %s24_s13  }
   0xb   : > { %p952_p5 = por %p32_p2, %p31_p0  ;;  %p956_p6 = por %p38_p4, %p37_p3 }
   0xc   : > { %p61_p7 = scmp.eq.s32.totalorder %s934_s10, 1  ;;  %p67_p8 = scmp.eq.s32.totalorder %s709_s11, 1 }
   0xd   : > { %s1542_s17 = scalar_select %p956_p6, 1, 0 }
   0xe   : > { %p741_p10 = scmp.lt.s32.totalorder %s895_s9, 2  ;;  %p963_p11 = por %p61_p7, %p31_p0 }
   0xf   : > { %p967_p12 = por %p67_p8, %p37_p3  ;;  %s87_s20 = sand.u32 1, %s891_s8  }
  0x10   : > { %s1543_s18 = scalar_select %p963_p11, 1, 0 }
  0x11   : > { %s1544_s19 = scalar_select %p967_p12, 1, 0 }
  0x12   : > { %s726_s21 = sshll.u32 %s895_s9, 10  ;;  %s712_s22 = sshll.u32 %s87_s20, 6 }
  0x13   : > { %s976_s25 = scalar_lea.hbm %s1537_s0, %s726_s21  ;;  %s91_s26 = scalar_lea.vmem [#allocation3], %s712_s22 }
  0x14   : > { %s99_s27 = sshll.u32 %s91_s26, 4  ;;  %p980_p13 = pnand %p741_p10, %p952_p5  ;;  %s984_s27 = int_to_ptr.vmem [resolvable:$true] %s99_s27 }
  0x15   : > { %s986_s29 = scalar_lea.sflag [#allocation4], %s87_s20  ;;  %s803_s30 = scalar_lea.hbm %s976_s25, 1024 }
  0x16   : > { %p804_p0 = scmp.ne.s32.totalorder %s976_s25, %s803_s30  ;;  %p805_p1 = pneg %p980_p13 }
  0x17   : > { %s808_s4 = scalar_lea.hbm %s1537_s0, 2048  ;;  %p809_p4 = scmp.lt.s32.totalorder %s976_s25, %s1537_s0 }
  0x18   : > { %p806_p2 = pnand %p805_p1, %p804_p0  ;;  %p810_p5 = scmp.lt.s32.totalorder %s808_s4, %s803_s30 }
  0x1a   : > { %p807_p3 = pneg %p806_p2  ;;  %p811_p7 = por %p810_p5, %p809_p4 }
  0x1c   : > { %p812_p8 = pnand %p811_p7, %p807_p3 }
  0x1e   : > { %815 = shalt.err (!%p812_p8)
}
  0x1f   : > { %s816_s13 = scalar_lea.vmem %s984_s27, 1024  ;;  %s897_s14 = smov [#allocation3]  }
  0x20   : > { %p817_p10 = scmp.ne.s32.totalorder %s984_s27, %s816_s13  ;;  %s821_s16 = sshll.u32 %s897_s14, 4  ;;  %s822_s16 = int_to_ptr.vmem [resolvable:$false] %s821_s16 }
  0x21   : > { %s823_s20 = scalar_lea.vmem %s822_s16, 2048  ;;  %p824_p2 = scmp.lt.s32.totalorder %s984_s27, %s822_s16 }
  0x22   : > { %p819_p9 = pnand %p817_p10, %p805_p1  ;;  %p825_p12 = scmp.lt.s32.totalorder %s823_s20, %s816_s13 }
  0x24   : > { %p820_p0 = pneg %p819_p9  ;;  %p826_p11 = por %p825_p12, %p824_p2 }
  0x26   : > { %p827_p6 = pnand %p826_p11, %p820_p0 }
  0x28   : > { %830 = shalt.err (!%p827_p6)
}
  0x29   : > { %s898_s21 = smov 128   ;;  %s899_s22 = smov 8  }
  0x2a   : > { %736 = dma.hbm_to_vmem [thread:$0]  (!%p980_p13), %s976_s25, 1024, %s984_s27, %s986_s29, %s898_s21, %s898_s21, %s899_s22  }
  0x2b   : > { %p716_p9 = scmp.ge.s32.totalorder %s895_s9, 1  ;;  %p107_p1 = scmp.lt.s32.totalorder %s895_s9, 3 }
  0x2d   : > { %p108_p3 = pnand %p716_p9, %p107_p1 }
  0x2e   : > { %s1010_s23 = sand.u32 (!%p108_p3), 1, %s887_s7   ;;  %p1546_p6 = scmp.ne.s32.totalorder (!%p108_p3), %s1542_s17, 0 }
  0x2f   : > { %111 = sbr.rel (%p108_p3) target bundleno = 511 (0x1ff), region = 24  ;;  %s717_s24 = sshll.u32 (!%p108_p3), %s1010_s23, 6 }
  0x30   : > { %s114_s26 = scalar_lea.sflag (!%p108_p3), [#allocation4], %s1010_s23  ;;  %s117_s30 = scalar_lea.vmem (!%p108_p3), [#allocation3], %s717_s24 }
  0x34   : > { %874 = dma.done.wait (%p1546_p6), %s114_s26, 1024  }
  0x35   : > { %876 = vsyncadd (%p1546_p6), %s114_s26, 4294966272  ;;  %v138_v0 = vlaneseq  ;;  %v154_v3 = vld [vmem:[%s117_s30 + $0x20] sm:$0xff]  ;;  %v162_v4 = vld [vmem:[%s117_s30 + $0x28] sm:$0xff]  ;;  %vm179_vm1 = vcmask 130048   ;;  %s135_s17 = scalar_lea.vmem [#allocation6], %s717_s24  ;;  %s728_s25 = sshll.u32 %s934_s10, 10 }
  0x36   : > { %v152_v5 = vld [vmem:[%s117_s30] sm:$0xff]  ;;  %v1022_v6 = vmul.f32 %v154_v3, %v154_v3  ;;  %v1024_v7 = vmul.f32 %v162_v4, %v162_v4  ;;  %v160_v9 = vld [vmem:[%s117_s30 + $0x8] sm:$0xff]  ;;  %v155_v10 = vld [vmem:[%s117_s30 + $0x30] sm:$0xff]  ;;  %s636_s27 = sshll.u32 %s135_s17, 4  ;;  %s1488_s2 = scalar_lea.hbm %s1538_s1, %s728_s25  ;;  %s1490_s27 = int_to_ptr.vmem [resolvable:$true] %s636_s27 }
  0x37   : > { %v139_v1 = vand.u32 127, %v138_v0  ;;  %v1026_v8 = vmul.f32 %v152_v5, %v152_v5  ;;  %v163_v11 = vld [vmem:[%s117_s30 + $0x38] sm:$0xff]  ;;  %v1029_v12 = vmul.f32 %v160_v9, %v160_v9  ;;  %v1031_v13 = vmul.f32 %v155_v10, %v155_v10  ;;  %v153_v15 = vld [vmem:[%s117_s30 + $0x10] sm:$0xff]  ;;  %s622_s10 = scalar_lea.sflag [#allocation5], %s1010_s23  ;;  %s831_s3 = scalar_lea.vmem %s1490_s27, 1024 }
  0x38   : > { %v1033_v14 = vmul.f32 %v163_v11, %v163_v11  ;;  %v161_v16 = vld [vmem:[%s117_s30 + $0x18] sm:$0xff]  ;;  %v1037_v17 = vmax.f32 %v1022_v6, %v1024_v7  ;;  %v1039_v18 = vmul.f32 %v153_v15, %v153_v15  ;;  %p832_p11 = scmp.ne.s32.totalorder %s1490_s27, %s831_s3  ;;  %p1547_p12 = scmp.ne.s32.totalorder %s1543_s18, 0 }
  0x39   : > { %v1020_v2 = vand.u32 7, %v139_v1  ;;  %v1041_v19 = vmul.f32 %v161_v16, %v161_v16  ;;  %v1045_v20 = vmax.f32 %v1026_v8, %v1029_v12  ;;  %s900_s4 = smov [#allocation6]  }
  0x3a   : > { %v1049_v21 = vmax.f32 %v1031_v13, %v1033_v14  ;;  %p833_p13 = pnand %p832_p11, %p1547_p12  ;;  %s835_s5 = sshll.u32 %s900_s4, 4  ;;  %s836_s5 = int_to_ptr.vmem [resolvable:$false] %s835_s5 }
  0x3b   : > { %vm172_vm0 = vcmp.eq.s32.totalorder %v1020_v2, 0  ;;  %v1056_v23 = vmax.f32 %v1039_v18, %v1041_v19  ;;  %vm196_vm2 = vcmp.eq.s32.totalorder %v1020_v2, 1  ;;  %vm219_vm3 = vcmp.eq.s32.totalorder %v1020_v2, 2  ;;  %s837_s11 = scalar_lea.vmem %s836_s5, 2048  ;;  %p838_p5 = scmp.lt.s32.totalorder %s1490_s27, %s836_s5 }
  0x3c   : > { %v177_v22 = vsel %vm172_vm0, %v1037_v17, -inf  ;;  %v175_v25 = vsel %vm172_vm0, %v1045_v20, -inf  ;;  %v178_v26 = vsel %vm172_vm0, %v1049_v21, -inf  ;;  %v199_v32 = vsel %vm196_vm2, %v1045_v20, -inf  ;;  %p834_p4 = pneg %p833_p13  ;;  %p839_p7 = scmp.lt.s32.totalorder %s837_s11, %s831_s3 }
  0x3d   : > { %v186_v24 = vsel %vm179_vm1, %v177_v22, -inf  ;;  %v180_v27 = vsel %vm179_vm1, %v175_v25, -inf  ;;  %v176_v28 = vsel %vm172_vm0, %v1056_v23, -inf  ;;  %v189_v29 = vsel %vm179_vm1, %v178_v26, -inf }
  0x3e   : > { %187 = vmax.xlane.f32.xlu1 %v186_v24  ;;  %181 = vmax.xlane.f32.xlu0 %v180_v27  ;;  %v183_v30 = vsel %vm179_vm1, %v176_v28, -inf  ;;  %v200_v31 = vsel %vm196_vm2, %v1056_v23, -inf  ;;  %v203_v34 = vsel %vm179_vm1, %v199_v32, -inf  ;;  %v202_v35 = vsel %vm196_vm2, %v1049_v21, -inf  ;;  %p840_p8 = por %p839_p7, %p838_p5 }
  0x3f   : > { %v206_v33 = vsel %vm179_vm1, %v200_v31, -inf  ;;  %v201_v36 = vsel %vm196_vm2, %v1037_v17, -inf  ;;  %v212_v37 = vsel %vm179_vm1, %v202_v35, -inf  ;;  %v223_v39 = vsel %vm219_vm3, %v1056_v23, -inf }
  0x40   : > { %v209_v38 = vsel %vm179_vm1, %v201_v36, -inf  ;;  %v222_v40 = vsel %vm219_vm3, %v1045_v20, -inf  ;;  %v229_v41 = vsel %vm179_vm1, %v223_v39, -inf  ;;  %v225_v43 = vsel %vm219_vm3, %v1049_v21, -inf  ;;  %p841_p10 = pnand %p840_p8, %p834_p4 }
  0x41   : > { %v226_v42 = vsel %vm179_vm1, %v222_v40, -inf  ;;  %v224_v44 = vsel %vm219_vm3, %v1037_v17, -inf  ;;  %vm242_vm4 = vcmp.eq.s32.totalorder %v1020_v2, 3  ;;  %v235_v45 = vsel %vm179_vm1, %v225_v43, -inf }
  0x42   : > { %190 = vmax.xlane.f32.xlu1 %v189_v29  ;;  %184 = vmax.xlane.f32.xlu0 %v183_v30  ;;  %v232_v46 = vsel %vm179_vm1, %v224_v44, -inf  ;;  %v246_v47 = vsel %vm242_vm4, %v1056_v23, -inf  ;;  %v245_v48 = vsel %vm242_vm4, %v1045_v20, -inf  ;;  %v248_v51 = vsel %vm242_vm4, %v1049_v21, -inf }
  0x43   : > { %v252_v49 = vsel %vm179_vm1, %v246_v47, -inf  ;;  %v249_v50 = vsel %vm179_vm1, %v245_v48, -inf  ;;  %v247_v52 = vsel %vm242_vm4, %v1037_v17, -inf  ;;  %vm265_vm5 = vcmp.eq.s32.totalorder %v1020_v2, 4 }
  0x44   : > { %v258_v53 = vsel %vm179_vm1, %v248_v51, -inf  ;;  %v255_v54 = vsel %vm179_vm1, %v247_v52, -inf  ;;  %v269_v55 = vsel %vm265_vm5, %v1056_v23, -inf  ;;  %v268_v56 = vsel %vm265_vm5, %v1045_v20, -inf }
  0x45   : > { %v275_v57 = vsel %vm179_vm1, %v269_v55, -inf  ;;  %v272_v58 = vsel %vm179_vm1, %v268_v56, -inf  ;;  %v271_v59 = vsel %vm265_vm5, %v1049_v21, -inf  ;;  %v270_v60 = vsel %vm265_vm5, %v1037_v17, -inf }
  0x46   : > { %207 = vmax.xlane.f32.xlu1 %v206_v33  ;;  %204 = vmax.xlane.f32.xlu0 %v203_v34  ;;  %vm288_vm6 = vcmp.eq.s32.totalorder %v1020_v2, 5  ;;  %v281_v61 = vsel %vm179_vm1, %v271_v59, -inf  ;;  %v278_v62 = vsel %vm179_vm1, %v270_v60, -inf  ;;  %vm311_vm7 = vcmp.eq.s32.totalorder %v1020_v2, 6 }
  0x47   : > { %v292_v63 = vsel %vm288_vm6, %v1056_v23, -inf  ;;  %v291_v0 = vsel %vm288_vm6, %v1045_v20, -inf  ;;  %v294_v4 = vsel %vm288_vm6, %v1049_v21, -inf  ;;  %v293_v5 = vsel %vm288_vm6, %v1037_v17, -inf }
  0x48   : > { %v298_v1 = vsel %vm179_vm1, %v292_v63, -inf  ;;  %v295_v3 = vsel %vm179_vm1, %v291_v0, -inf  ;;  %v304_v9 = vsel %vm179_vm1, %v294_v4, -inf  ;;  %v301_v10 = vsel %vm179_vm1, %v293_v5, -inf }
  0x49   : > { %v315_v11 = vsel %vm311_vm7, %v1056_v23, -inf  ;;  %v314_v15 = vsel %vm311_vm7, %v1045_v20, -inf  ;;  %v317_v24 = vsel %vm311_vm7, %v1049_v21, -inf  ;;  %v316_v25 = vsel %vm311_vm7, %v1037_v17, -inf }
  0x4a   : > { %213 = vmax.xlane.f32.xlu1 %v212_v37  ;;  %210 = vmax.xlane.f32.xlu0 %v209_v38  ;;  %v321_v16 = vsel %vm179_vm1, %v315_v11, -inf  ;;  %v318_v22 = vsel %vm179_vm1, %v314_v15, -inf  ;;  %vm334_vm8 = vcmp.eq.s32.totalorder %v1020_v2, 7  ;;  %v327_v26 = vsel %vm179_vm1, %v317_v24, -inf }
  0x4b   : > { %v324_v27 = vsel %vm179_vm1, %v316_v25, -inf  ;;  %v338_v28 = vsel %vm334_vm8, %v1056_v23, -inf  ;;  %v337_v29 = vsel %vm334_vm8, %v1045_v20, -inf  ;;  %v340_v32 = vsel %vm334_vm8, %v1049_v21, -inf }
  0x4c   : > { %v344_v30 = vsel %vm179_vm1, %v338_v28, -inf  ;;  %v341_v31 = vsel %vm179_vm1, %v337_v29, -inf  ;;  %v339_v33 = vsel %vm334_vm8, %v1037_v17, -inf  ;;  %v350_v23 = vsel %vm179_vm1, %v340_v32, -inf }
  0x4d   : > { %v347_v20 = vsel %vm179_vm1, %v339_v33, -inf }
  0x4e   : > { %230 = vmax.xlane.f32.xlu1 %v229_v41  ;;  %227 = vmax.xlane.f32.xlu0 %v226_v42 }
  0x52   : > { %236 = vmax.xlane.f32.xlu1 %v235_v45  ;;  %233 = vmax.xlane.f32.xlu0 %v232_v46 }
  0x56   : > { %253 = vmax.xlane.f32.xlu1 %v252_v49  ;;  %250 = vmax.xlane.f32.xlu0 %v249_v50 }
  0x5a   : > { %259 = vmax.xlane.f32.xlu1 %v258_v53  ;;  %256 = vmax.xlane.f32.xlu0 %v255_v54 }
  0x5e   : > { %276 = vmax.xlane.f32.xlu1 %v275_v57  ;;  %273 = vmax.xlane.f32.xlu0 %v272_v58 }
  0x62   : > { %282 = vmax.xlane.f32.xlu1 %v281_v61  ;;  %279 = vmax.xlane.f32.xlu0 %v278_v62 }
  0x66   : > { %299 = vmax.xlane.f32.xlu1 %v298_v1  ;;  %296 = vmax.xlane.f32.xlu0 %v295_v3 }
  0x6a   : > { %305 = vmax.xlane.f32.xlu1 %v304_v9  ;;  %302 = vmax.xlane.f32.xlu0 %v301_v10 }
  0x6e   : > { %322 = vmax.xlane.f32.xlu1 %v321_v16  ;;  %319 = vmax.xlane.f32.xlu0 %v318_v22 }
  0x72   : > { %328 = vmax.xlane.f32.xlu1 %v327_v26  ;;  %325 = vmax.xlane.f32.xlu0 %v324_v27 }
  0x76   : > { %345 = vmax.xlane.f32.xlu1 %v344_v30  ;;  %342 = vmax.xlane.f32.xlu0 %v341_v31 }
  0x7a   : > { %351 = vmax.xlane.f32.xlu1 %v350_v23  ;;  %348 = vmax.xlane.f32.xlu0 %v347_v20 }
  0xc7   : > { %v188_v34 = vpop.xlane.xlu1 %187  ;;  %v182_v35 = vpop.xlane.xlu0 %181 }
  0xc8   : > { %v192_v59 = vsel %vm172_vm0, %v182_v35, 0.0  ;;  %v194_v4 = vsel %vm172_vm0, %v188_v34, 0.0 }
  0xcb   : > { %v191_v36 = vpop.xlane.xlu1 %190  ;;  %v185_v37 = vpop.xlane.xlu0 %184 }
  0xcc   : > { %v193_v58 = vsel %vm172_vm0, %v185_v37, 0.0  ;;  %v195_v5 = vsel %vm172_vm0, %v191_v36, 0.0 }
  0xcf   : > { %v208_v38 = vpop.xlane.xlu1 %207  ;;  %v205_v39 = vpop.xlane.xlu0 %204 }
  0xd0   : > { %v216_v60 = vsel %vm196_vm2, %v208_v38, %v193_v58  ;;  %v215_v61 = vsel %vm196_vm2, %v205_v39, %v192_v59 }
  0xd3   : > { %v214_v40 = vpop.xlane.xlu1 %213  ;;  %v211_v21 = vpop.xlane.xlu0 %210 }
  0xd4   : > { %v218_v11 = vsel %vm196_vm2, %v214_v40, %v195_v5  ;;  %v217_v15 = vsel %vm196_vm2, %v211_v21, %v194_v4 }
  0xd7   : > { %v231_v41 = vpop.xlane.xlu1 %230  ;;  %v228_v42 = vpop.xlane.xlu0 %227 }
  0xd8   : > { %v239_v62 = vsel %vm219_vm3, %v231_v41, %v216_v60  ;;  %v238_v0 = vsel %vm219_vm3, %v228_v42, %v215_v61 }
  0xdb   : > { %v237_v43 = vpop.xlane.xlu1 %236  ;;  %v234_v17 = vpop.xlane.xlu0 %233 }
  0xdc   : > { %v241_v24 = vsel %vm219_vm3, %v237_v43, %v218_v11  ;;  %v240_v25 = vsel %vm219_vm3, %v234_v17, %v217_v15 }
  0xdf   : > { %v254_v44 = vpop.xlane.xlu1 %253  ;;  %v251_v45 = vpop.xlane.xlu0 %250 }
  0xe0   : > { %v262_v1 = vsel %vm242_vm4, %v254_v44, %v239_v62  ;;  %v261_v9 = vsel %vm242_vm4, %v251_v45, %v238_v0 }
  0xe3   : > { %v260_v46 = vpop.xlane.xlu1 %259  ;;  %v257_v47 = vpop.xlane.xlu0 %256 }
  0xe4   : > { %v264_v29 = vsel %vm242_vm4, %v260_v46, %v241_v24  ;;  %v263_v30 = vsel %vm242_vm4, %v257_v47, %v240_v25 }
  0xe7   : > { %v277_v48 = vpop.xlane.xlu1 %276  ;;  %v274_v49 = vpop.xlane.xlu0 %273 }
  0xe8   : > { %v285_v10 = vsel %vm265_vm5, %v277_v48, %v262_v1  ;;  %v284_v16 = vsel %vm265_vm5, %v274_v49, %v261_v9 }
  0xeb   : > { %v283_v50 = vpop.xlane.xlu1 %282  ;;  %v280_v51 = vpop.xlane.xlu0 %279 }
  0xec   : > { %v287_v23 = vsel %vm265_vm5, %v283_v50, %v264_v29  ;;  %v286_v36 = vsel %vm265_vm5, %v280_v51, %v263_v30 }
  0xef   : > { %v300_v52 = vpop.xlane.xlu1 %299  ;;  %v297_v53 = vpop.xlane.xlu0 %296 }
  0xf0   : > { %v308_v22 = vsel %vm288_vm6, %v300_v52, %v285_v10  ;;  %v307_v26 = vsel %vm288_vm6, %v297_v53, %v284_v16 }
  0xf3   : > { %v306_v54 = vpop.xlane.xlu1 %305  ;;  %v303_v55 = vpop.xlane.xlu0 %302 }
  0xf4   : > { %v310_v37 = vsel %vm288_vm6, %v306_v54, %v287_v23  ;;  %v309_v40 = vsel %vm288_vm6, %v303_v55, %v286_v36 }
  0xf7   : > { %v323_v56 = vpop.xlane.xlu1 %322  ;;  %v320_v57 = vpop.xlane.xlu0 %319 }
  0xf8   : > { %v331_v27 = vsel %vm311_vm7, %v323_v56, %v308_v22  ;;  %v330_v31 = vsel %vm311_vm7, %v320_v57, %v307_v26 }
  0xfb   : > { %v329_v63 = vpop.xlane.xlu1 %328  ;;  %v326_v3 = vpop.xlane.xlu0 %325 }
  0xfc   : > { %v333_v21 = vsel %vm311_vm7, %v329_v63, %v310_v37  ;;  %v332_v17 = vsel %vm311_vm7, %v326_v3, %v309_v40 }
  0xff   : > { %v346_v28 = vpop.xlane.xlu1 %345  ;;  %v343_v33 = vpop.xlane.xlu0 %342 }
 0x100   : > { %v354_v32 = vsel %vm334_vm8, %v346_v28, %v331_v27  ;;  %v353_v35 = vsel %vm334_vm8, %v343_v33, %v330_v31 }
 0x101   : > { %v358_v20 = vsub.f32 %v1039_v18, %v354_v32  ;;  %v386_v34 = vsub.f32 %v1041_v19, %v354_v32  ;;  %v357_v38 = vsub.f32 %v1026_v8, %v353_v35  ;;  %v385_v39 = vsub.f32 %v1029_v12, %v353_v35 }
 0x103   : > { %v363_v41 = vmul.f32 1.442695, %v358_v20  ;;  %v391_v42 = vmul.f32 1.442695, %v386_v34  ;;  %v352_v43 = vpop.xlane.xlu1 %351  ;;  %v361_v44 = vmul.f32 1.442695, %v357_v38  ;;  %v349_v47 = vpop.xlane.xlu0 %348 }
 0x104   : > { %v389_v45 = vmul.f32 1.442695, %v385_v39  ;;  %v356_v46 = vsel %vm334_vm8, %v352_v43, %v333_v21  ;;  %v355_v50 = vsel %vm334_vm8, %v349_v47, %v332_v17 }
 0x105   : > { %779 = vpow2.f32 %v363_v41  ;;  %v360_v48 = vsub.f32 %v1031_v13, %v356_v46  ;;  %v388_v49 = vsub.f32 %v1033_v14, %v356_v46  ;;  %v359_v51 = vsub.f32 %v1022_v6, %v355_v50 }
 0x106   : > { %781 = vpow2.f32 %v391_v42  ;;  %v387_v52 = vsub.f32 %v1024_v7, %v355_v50 }
 0x107   : > { %783 = vpow2.f32 %v361_v44  ;;  %v367_v53 = vmul.f32 1.442695, %v360_v48  ;;  %v395_v54 = vmul.f32 1.442695, %v388_v49  ;;  %v365_v55 = vmul.f32 1.442695, %v359_v51 }
 0x108   : > { %785 = vpow2.f32 %v389_v45  ;;  %v393_v56 = vmul.f32 1.442695, %v387_v52 }
 0x109   : > { %787 = vpow2.f32 %v367_v53 }
 0x10a   : > { %789 = vpow2.f32 %v395_v54 }
 0x10b   : > { %791 = vpow2.f32 %v365_v55 }
 0x10c   : > { %793 = vpow2.f32 %v393_v56 }
 0x112   : > { %v780_v57 = vpop.eup %779 }
 0x113   : > { %v782_v58 = vpop.eup %781  ;;  %370 = vst.msk [vmem:[#allocation2 + $0x10] sm:$0xff] %vm179_vm1, %v780_v57 }
 0x114   : > { %v784_v59 = vpop.eup %783  ;;  %398 = vst.msk [vmem:[#allocation2 + $0x18] sm:$0xff] %vm179_vm1, %v782_v58  ;;  %v1264_v60 = vadd.f32 %v782_v58, %v780_v57 }
 0x115   : > { %v786_v61 = vpop.eup %785  ;;  %369 = vst.msk [vmem:[#allocation2] sm:$0xff] %vm179_vm1, %v784_v59 }
 0x116   : > { %v788_v62 = vpop.eup %787  ;;  %397 = vst.msk [vmem:[#allocation2 + $0x8] sm:$0xff] %vm179_vm1, %v786_v61  ;;  %v1268_v63 = vadd.f32 %v786_v61, %v784_v59  ;;  %v406_v0 = vsel %vm172_vm0, %v1264_v60, 0.0  ;;  %v426_v25 = vsel %vm196_vm2, %v1264_v60, 0.0  ;;  %v446_v33 = vsel %vm219_vm3, %v1264_v60, 0.0 }
 0x117   : > { %v790_v1 = vpop.eup %789  ;;  %372 = vst.msk [vmem:[#allocation2 + $0x30] sm:$0xff] %vm179_vm1, %v788_v62  ;;  %v412_v3 = vsel %vm179_vm1, %v406_v0, 0.0  ;;  %v432_v28 = vsel %vm179_vm1, %v426_v25, 0.0  ;;  %v452_v34 = vsel %vm179_vm1, %v446_v33, 0.0  ;;  %v466_v39 = vsel %vm242_vm4, %v1264_v60, 0.0 }
 0x118   : > { %v792_v4 = vpop.eup %791  ;;  %400 = vst.msk [vmem:[#allocation2 + $0x38] sm:$0xff] %vm179_vm1, %v790_v1  ;;  %v1276_v5 = vadd.f32 %v790_v1, %v788_v62  ;;  %413 = vadd.xlane.f32.xlu1 %v412_v3  ;;  %v405_v9 = vsel %vm172_vm0, %v1268_v63, 0.0  ;;  %v425_v27 = vsel %vm196_vm2, %v1268_v63, 0.0  ;;  %v445_v20 = vsel %vm219_vm3, %v1268_v63, 0.0 }
 0x119   : > { %v794_v10 = vpop.eup %793  ;;  %371 = vst.msk [vmem:[#allocation2 + $0x20] sm:$0xff] %vm179_vm1, %v792_v4  ;;  %v409_v11 = vsel %vm179_vm1, %v405_v9, 0.0  ;;  %v429_v30 = vsel %vm179_vm1, %v425_v27, 0.0  ;;  %v449_v36 = vsel %vm179_vm1, %v445_v20, 0.0  ;;  %v465_v21 = vsel %vm242_vm4, %v1268_v63, 0.0 }
 0x11a   : > { %399 = vst.msk [vmem:[#allocation2 + $0x28] sm:$0xff] %vm179_vm1, %v794_v10  ;;  %v1284_v15 = vadd.f32 %v794_v10, %v792_v4  ;;  %410 = vadd.xlane.f32.xlu0 %v409_v11  ;;  %v408_v16 = vsel %vm172_vm0, %v1276_v5, 0.0  ;;  %v428_v29 = vsel %vm196_vm2, %v1276_v5, 0.0  ;;  %v448_v35 = vsel %vm219_vm3, %v1276_v5, 0.0 }
 0x11b   : > { %v418_v22 = vsel %vm179_vm1, %v408_v16, 0.0  ;;  %v438_v32 = vsel %vm179_vm1, %v428_v29, 0.0  ;;  %v458_v38 = vsel %vm179_vm1, %v448_v35, 0.0  ;;  %v472_v41 = vsel %vm179_vm1, %v466_v39, 0.0 }
 0x11c   : > { %419 = vadd.xlane.f32.xlu1 %v418_v22  ;;  %v407_v24 = vsel %vm172_vm0, %v1284_v15, 0.0  ;;  %v427_v31 = vsel %vm196_vm2, %v1284_v15, 0.0  ;;  %v447_v37 = vsel %vm219_vm3, %v1284_v15, 0.0  ;;  %v468_v42 = vsel %vm242_vm4, %v1276_v5, 0.0 }
 0x11d   : > { %v415_v26 = vsel %vm179_vm1, %v407_v24, 0.0  ;;  %v435_v23 = vsel %vm179_vm1, %v427_v31, 0.0  ;;  %v455_v40 = vsel %vm179_vm1, %v447_v37, 0.0  ;;  %v469_v43 = vsel %vm179_vm1, %v465_v21, 0.0 }
 0x11e   : > { %416 = vadd.xlane.f32.xlu0 %v415_v26  ;;  %v467_v17 = vsel %vm242_vm4, %v1284_v15, 0.0  ;;  %v478_v44 = vsel %vm179_vm1, %v468_v42, 0.0  ;;  %v486_v45 = vsel %vm265_vm5, %v1264_v60, 0.0  ;;  %v485_v47 = vsel %vm265_vm5, %v1268_v63, 0.0 }
 0x11f   : > { %v475_v46 = vsel %vm179_vm1, %v467_v17, 0.0  ;;  %v492_v48 = vsel %vm179_vm1, %v486_v45, 0.0  ;;  %v488_v49 = vsel %vm265_vm5, %v1276_v5, 0.0  ;;  %v489_v50 = vsel %vm179_vm1, %v485_v47, 0.0 }
 0x120   : > { %433 = vadd.xlane.f32.xlu1 %v432_v28  ;;  %v487_v51 = vsel %vm265_vm5, %v1284_v15, 0.0  ;;  %v498_v52 = vsel %vm179_vm1, %v488_v49, 0.0  ;;  %v506_v53 = vsel %vm288_vm6, %v1264_v60, 0.0  ;;  %v505_v55 = vsel %vm288_vm6, %v1268_v63, 0.0 }
 0x121   : > { %v495_v54 = vsel %vm179_vm1, %v487_v51, 0.0  ;;  %v512_v56 = vsel %vm179_vm1, %v506_v53, 0.0  ;;  %v508_v57 = vsel %vm288_vm6, %v1276_v5, 0.0  ;;  %v509_v58 = vsel %vm179_vm1, %v505_v55, 0.0 }
 0x122   : > { %430 = vadd.xlane.f32.xlu0 %v429_v30  ;;  %v507_v59 = vsel %vm288_vm6, %v1284_v15, 0.0  ;;  %v518_v61 = vsel %vm179_vm1, %v508_v57, 0.0  ;;  %v526_v62 = vsel %vm311_vm7, %v1264_v60, 0.0  ;;  %v525_v1 = vsel %vm311_vm7, %v1268_v63, 0.0 }
 0x123   : > { %v515_v0 = vsel %vm179_vm1, %v507_v59, 0.0  ;;  %v532_v3 = vsel %vm179_vm1, %v526_v62, 0.0  ;;  %v528_v4 = vsel %vm311_vm7, %v1276_v5, 0.0  ;;  %v529_v9 = vsel %vm179_vm1, %v525_v1, 0.0 }
 0x124   : > { %439 = vadd.xlane.f32.xlu1 %v438_v32  ;;  %v527_v10 = vsel %vm311_vm7, %v1284_v15, 0.0  ;;  %v538_v11 = vsel %vm179_vm1, %v528_v4, 0.0  ;;  %v546_v16 = vsel %vm334_vm8, %v1264_v60, 0.0  ;;  %v545_v24 = vsel %vm334_vm8, %v1268_v63, 0.0 }
 0x125   : > { %v535_v22 = vsel %vm179_vm1, %v527_v10, 0.0  ;;  %v552_v25 = vsel %vm179_vm1, %v546_v16, 0.0  ;;  %v548_v26 = vsel %vm334_vm8, %v1276_v5, 0.0  ;;  %v549_v27 = vsel %vm179_vm1, %v545_v24, 0.0 }
 0x126   : > { %436 = vadd.xlane.f32.xlu0 %v435_v23  ;;  %v547_v60 = vsel %vm334_vm8, %v1284_v15, 0.0  ;;  %v558_v28 = vsel %vm179_vm1, %v548_v26, 0.0 }
 0x127   : > { %v555_v29 = vsel %vm179_vm1, %v547_v60, 0.0 }
 0x128   : > { %453 = vadd.xlane.f32.xlu1 %v452_v34 }
 0x12a   : > { %450 = vadd.xlane.f32.xlu0 %v449_v36 }
 0x12c   : > { %459 = vadd.xlane.f32.xlu1 %v458_v38 }
 0x12e   : > { %456 = vadd.xlane.f32.xlu0 %v455_v40 }
 0x130   : > { %473 = vadd.xlane.f32.xlu1 %v472_v41 }
 0x132   : > { %470 = vadd.xlane.f32.xlu0 %v469_v43 }
 0x134   : > { %479 = vadd.xlane.f32.xlu1 %v478_v44 }
 0x136   : > { %476 = vadd.xlane.f32.xlu0 %v475_v46 }
 0x138   : > { %493 = vadd.xlane.f32.xlu1 %v492_v48 }
 0x13a   : > { %490 = vadd.xlane.f32.xlu0 %v489_v50 }
 0x13c   : > { %499 = vadd.xlane.f32.xlu1 %v498_v52 }
 0x13e   : > { %496 = vadd.xlane.f32.xlu0 %v495_v54 }
 0x140   : > { %513 = vadd.xlane.f32.xlu1 %v512_v56 }
 0x142   : > { %510 = vadd.xlane.f32.xlu0 %v509_v58 }
 0x144   : > { %519 = vadd.xlane.f32.xlu1 %v518_v61 }
 0x146   : > { %516 = vadd.xlane.f32.xlu0 %v515_v0 }
 0x148   : > { %533 = vadd.xlane.f32.xlu1 %v532_v3 }
 0x14a   : > { %530 = vadd.xlane.f32.xlu0 %v529_v9 }
 0x14c   : > { %539 = vadd.xlane.f32.xlu1 %v538_v11 }
 0x14e   : > { %536 = vadd.xlane.f32.xlu0 %v535_v22 }
 0x150   : > { %553 = vadd.xlane.f32.xlu1 %v552_v25 }
 0x152   : > { %550 = vadd.xlane.f32.xlu0 %v549_v27 }
 0x154   : > { %559 = vadd.xlane.f32.xlu1 %v558_v28 }
 0x156   : > { %556 = vadd.xlane.f32.xlu0 %v555_v29 }
 0x1a1   : > { %v414_v63 = vpop.xlane.xlu1 %413 }
 0x1a2   : > { %v422_v48 = vsel %vm172_vm0, %v414_v63, 0.0 }
 0x1a3   : > { %v411_v30 = vpop.xlane.xlu0 %410 }
 0x1a4   : > { %v421_v51 = vsel %vm172_vm0, %v411_v30, 0.0 }
 0x1a5   : > { %v420_v31 = vpop.xlane.xlu1 %419 }
 0x1a6   : > { %v424_v56 = vsel %vm172_vm0, %v420_v31, 0.0 }
 0x1a7   : > { %v417_v32 = vpop.xlane.xlu0 %416 }
 0x1a8   : > { %v423_v1 = vsel %vm172_vm0, %v417_v32, 0.0 }
 0x1a9   : > { %v434_v33 = vpop.xlane.xlu1 %433 }
 0x1aa   : > { %v442_v50 = vsel %vm196_vm2, %v434_v33, %v422_v48 }
 0x1ab   : > { %v431_v23 = vpop.xlane.xlu0 %430 }
 0x1ac   : > { %v441_v54 = vsel %vm196_vm2, %v431_v23, %v421_v51 }
 0x1ad   : > { %v440_v5 = vpop.xlane.xlu1 %439 }
 0x1ae   : > { %v444_v61 = vsel %vm196_vm2, %v440_v5, %v424_v56 }
 0x1af   : > { %v437_v20 = vpop.xlane.xlu0 %436 }
 0x1b0   : > { %v443_v11 = vsel %vm196_vm2, %v437_v20, %v423_v1 }
 0x1b1   : > { %v454_v34 = vpop.xlane.xlu1 %453 }
 0x1b2   : > { %v462_v52 = vsel %vm219_vm3, %v454_v34, %v442_v50 }
 0x1b3   : > { %v451_v35 = vpop.xlane.xlu0 %450 }
 0x1b4   : > { %v461_v57 = vsel %vm219_vm3, %v451_v35, %v441_v54  ;;  %v598_v35 = vld [vmem:[#allocation2 + $0x18] sm:$0xff] }
 0x1b5   : > { %v460_v36 = vpop.xlane.xlu1 %459 }
 0x1b6   : > { %v464_v3 = vsel %vm219_vm3, %v460_v36, %v444_v61  ;;  %v574_v36 = vld [vmem:[#allocation2 + $0x10] sm:$0xff] }
 0x1b7   : > { %v457_v37 = vpop.xlane.xlu0 %456 }
 0x1b8   : > { %v463_v25 = vsel %vm219_vm3, %v457_v37, %v443_v11  ;;  %v573_v37 = vld [vmem:[#allocation2] sm:$0xff] }
 0x1b9   : > { %v474_v38 = vpop.xlane.xlu1 %473 }
 0x1ba   : > { %v482_v55 = vsel %vm242_vm4, %v474_v38, %v462_v52  ;;  %v597_v38 = vld [vmem:[#allocation2 + $0x8] sm:$0xff] }
 0x1bb   : > { %v471_v15 = vpop.xlane.xlu0 %470  ;;  %v609_v2 = vmul.f32 %v597_v38, %v1029_v12 }
 0x1bc   : > { %v481_v62 = vsel %vm242_vm4, %v471_v15, %v461_v57  ;;  %v610_v15 = vmul.f32 %v598_v35, %v1041_v19 }
 0x1bd   : > { %v480_v39 = vpop.xlane.xlu1 %479 }
 0x1be   : > { %v484_v16 = vsel %vm242_vm4, %v480_v39, %v464_v3  ;;  %v586_v39 = vmul.f32 %v574_v36, %v1039_v18 }
 0x1bf   : > { %v477_v40 = vpop.xlane.xlu0 %476 }
 0x1c0   : > { %v483_v28 = vsel %vm242_vm4, %v477_v40, %v463_v25 }
 0x1c1   : > { %v494_v21 = vpop.xlane.xlu1 %493 }
 0x1c2   : > { %v502_v58 = vsel %vm265_vm5, %v494_v21, %v482_v55  ;;  %v576_v21 = vld [vmem:[#allocation2 + $0x30] sm:$0xff] }
 0x1c3   : > { %v491_v41 = vpop.xlane.xlu0 %490 }
 0x1c4   : > { %v501_v4 = vsel %vm265_vm5, %v491_v41, %v481_v62  ;;  %v600_v41 = vld [vmem:[#allocation2 + $0x38] sm:$0xff] }
 0x1c5   : > { %v500_v42 = vpop.xlane.xlu1 %499  ;;  %v612_v48 = vmul.f32 %v600_v41, %v1033_v14 }
 0x1c6   : > { %v504_v26 = vsel %vm265_vm5, %v500_v42, %v484_v16 }
 0x1c7   : > { %v497_v43 = vpop.xlane.xlu0 %496 }
 0x1c8   : > { %v503_v30 = vsel %vm265_vm5, %v497_v43, %v483_v28 }
 0x1c9   : > { %v514_v17 = vpop.xlane.xlu1 %513 }
 0x1ca   : > { %v522_v0 = vsel %vm288_vm6, %v514_v17, %v502_v58  ;;  %v585_v17 = vmul.f32 %v573_v37, %v1026_v8 }
 0x1cb   : > { %v511_v44 = vpop.xlane.xlu0 %510 }
 0x1cc   : > { %v521_v22 = vsel %vm288_vm6, %v511_v44, %v501_v4 }
 0x1cd   : > { %v520_v45 = vpop.xlane.xlu1 %519 }
 0x1ce   : > { %v524_v29 = vsel %vm288_vm6, %v520_v45, %v504_v26  ;;  %v575_v45 = vld [vmem:[#allocation2 + $0x20] sm:$0xff] }
 0x1cf   : > { %v517_v46 = vpop.xlane.xlu0 %516  ;;  %v587_v50 = vmul.f32 %v575_v45, %v1022_v6 }
 0x1d0   : > { %v523_v33 = vsel %vm288_vm6, %v517_v46, %v503_v30  ;;  %v599_v46 = vld [vmem:[#allocation2 + $0x28] sm:$0xff] }
 0x1d1   : > { %v534_v47 = vpop.xlane.xlu1 %533  ;;  %v611_v51 = vmul.f32 %v599_v46, %v1024_v7 }
 0x1d2   : > { %v542_v9 = vsel %vm311_vm7, %v534_v47, %v522_v0  ;;  %v588_v47 = vmul.f32 %v576_v21, %v1031_v13 }
 0x1d3   : > { %v531_v49 = vpop.xlane.xlu0 %530 }
 0x1d4   : > { %v541_v27 = vsel %vm311_vm7, %v531_v49, %v521_v22 }
 0x1d5   : > { %v540_v53 = vpop.xlane.xlu1 %539 }
 0x1d6   : > { %v544_v31 = vsel %vm311_vm7, %v540_v53, %v524_v29 }
 0x1d7   : > { %v537_v59 = vpop.xlane.xlu0 %536 }
 0x1d8   : > { %v543_v5 = vsel %vm311_vm7, %v537_v59, %v523_v33 }
 0x1d9   : > { %v554_v10 = vpop.xlane.xlu1 %553 }
 0x1da   : > { %v562_v24 = vsel %vm334_vm8, %v554_v10, %v542_v9 }
 0x1db   : > { %795 = vrcp.f32 %v562_v24  ;;  %v551_v60 = vpop.xlane.xlu0 %550 }
 0x1dc   : > { %v561_v63 = vsel %vm334_vm8, %v551_v60, %v541_v27 }
 0x1dd   : > { %797 = vrcp.f32 %v561_v63  ;;  %v560_v32 = vpop.xlane.xlu1 %559 }
 0x1de   : > { %v564_v23 = vsel %vm334_vm8, %v560_v32, %v544_v31 }
 0x1df   : > { %799 = vrcp.f32 %v564_v23  ;;  %v557_v20 = vpop.xlane.xlu0 %556 }
 0x1e0   : > { %v563_v34 = vsel %vm334_vm8, %v557_v20, %v543_v5 }
 0x1e1   : > { %801 = vrcp.f32 %v563_v34 }
 0x1e8   : > { %v796_v40 = vpop.eup %795 }
 0x1e9   : > { %v590_v42 = vmul.f32 %v796_v40, %v586_v39  ;;  %v614_v43 = vmul.f32 %v796_v40, %v610_v15 }
 0x1ea   : > { %v798_v44 = vpop.eup %797 }
 0x1eb   : > { %594 = vst.msk [vmem:[%s135_s17 + $0x10] sm:$0xff] %vm179_vm1, %v590_v42  ;;  %618 = vst.msk [vmem:[%s135_s17 + $0x18] sm:$0xff] %vm179_vm1, %v614_v43  ;;  %v589_v18 = vmul.f32 %v798_v44, %v585_v17  ;;  %v613_v19 = vmul.f32 %v798_v44, %v609_v2 }
 0x1ec   : > { %v800_v8 = vpop.eup %799 }
 0x1ed   : > { %593 = vst.msk [vmem:[%s135_s17] sm:$0xff] %vm179_vm1, %v589_v18  ;;  %617 = vst.msk [vmem:[%s135_s17 + $0x8] sm:$0xff] %vm179_vm1, %v613_v19  ;;  %v592_v12 = vmul.f32 %v800_v8, %v588_v47  ;;  %v616_v49 = vmul.f32 %v800_v8, %v612_v48 }
 0x1ee   : > { %v802_v52 = vpop.eup %801 }
 0x1ef   : > { %596 = vst.msk [vmem:[%s135_s17 + $0x30] sm:$0xff] %vm179_vm1, %v592_v12  ;;  %620 = vst.msk [vmem:[%s135_s17 + $0x38] sm:$0xff] %vm179_vm1, %v616_v49  ;;  %v591_v13 = vmul.f32 %v802_v52, %v587_v50  ;;  %v615_v14 = vmul.f32 %v802_v52, %v611_v51 }
 0x1f1   : > { %595 = vst.msk [vmem:[%s135_s17 + $0x20] sm:$0xff] %vm179_vm1, %v591_v13  ;;  %619 = vst.msk [vmem:[%s135_s17 + $0x28] sm:$0xff] %vm179_vm1, %v615_v14 }
 0x1f2   : > { %844 = shalt.err (!%p841_p10)
}
 0x1f3   : > { %s845_s13 = scalar_lea.hbm %s1488_s2, 1024  ;;  %s849_s20 = scalar_lea.hbm %s1538_s1, 2048 }
 0x1f4   : > { %p846_p0 = scmp.ne.s32.totalorder %s1488_s2, %s845_s13  ;;  %p850_p1 = scmp.lt.s32.totalorder %s1488_s2, %s1538_s1 }
 0x1f5   : > { %p851_p3 = scmp.lt.s32.totalorder %s849_s20, %s845_s13 }
 0x1f6   : > { %p847_p2 = pnand %p846_p0, %p1547_p12 }
 0x1f7   : > { %p852_p6 = por %p851_p3, %p850_p1 }
 0x1f8   : > { %p848_p9 = pneg %p847_p2 }
 0x1fa   : > { %p853_p11 = pnand %p852_p6, %p848_p9 }
 0x1fc   : > { %856 = shalt.err (!%p853_p11)
}
 0x1fd   : > { %s901_s24 = smov 128   ;;  %s902_s26 = smov 8  }
 0x1fe   : > { %731 = dma.vmem_to_hbm [thread:$0]  (%p1547_p12), %s1490_s27, 1024, %s1488_s2, %s622_s10, %s901_s24, %s901_s24, %s902_s26  }
 0x1ff PF: > { %s651_s30 = sand.u32 1, %s883_s6   ;;  %p1548_p13 = scmp.ne.s32.totalorder %s1544_s19, 0 }
 0x200   : > { %p1549_p4 = scmp.ge.s32.totalorder %s895_s9, 2  ;;  %s652_s17 = scalar_lea.sflag [#allocation5], %s651_s30 }
 0x202   : > { %p738_p5 = pnand %p1549_p4, %p1548_p13 }
 0x204   : > { %p739_p7 = pneg %p738_p5 }
 0x206   : > { %878 = dma.done.wait (%p739_p7), %s652_s17, 1024  }
 0x207   : > { %880 = vsyncadd (%p739_p7), %s652_s17, 4294966272  ;;  %p14_p8 = scmp.ge.s32.totalorder %s938_s12, 4   ;;  %s1550_s6 = smov %s887_s7 }
 0x208   : > { %s1551_s7 = smov %s891_s8  ;;  %s1552_s8 = smov %s950_s15 }
 0x209   : > { %s1553_s9 = smov %s938_s12  ;;  %16 = sbr.rel (!%p14_p8) target bundleno = 5 (0x5), region = 69 }
 0x20e   :  { %657 = vsyncpa [#allocation4], 1 }
 0x20f   :  { %659 = vsyncpa [#allocation4 + $0x1], 1 }
 0x210   :  { %660 = vsyncpa [#allocation5], 1 }
 0x211   :  { %662 = vsyncpa [#allocation5 + $0x1], 1 }

</bundles_post_ra>
